<compile_context>
chip_gen: v6e
topology: v6e:2x2x1
jax: 0.10.0
libtpu: 0.0.40
codegen_flags: <defaults>
</compile_context>

<pallas_src>
import math

import jax
import jax.numpy as jnp
from jax.experimental import pallas as pl
from jax.experimental.pallas import tpu as pltpu


# ----------------------------------------------------------------------------
# PyTorch bilinear (align_corners=False) interpolation matrix, out = M @ in
# ----------------------------------------------------------------------------
def _interp_matrix(in_size: int, out_size: int) -> jnp.ndarray:
    scale = in_size / out_size
    mat = [[0.0] * in_size for _ in range(out_size)]
    for o in range(out_size):
        src = (o + 0.5) * scale - 0.5
        if src < 0.0:
            src = 0.0
        i0 = int(math.floor(src))
        i1 = min(i0 + 1, in_size - 1)
        w1 = src - i0
        mat[o][i0] += 1.0 - w1
        mat[o][i1] += w1
    return jnp.array(mat, dtype=jnp.float32)


def _padded_row_interp_tiles(H: int, th: int) -> jnp.ndarray:
    """(T, 2*th+2, H) per-row-tile slices of the padded row-interp matrix.

    Row 0 / row 2H+1 of the padded matrix are zero -> they realise the 3x3
    conv's zero padding at the top/bottom image edge; interior tiles pick up
    the 1-row halo from the neighbouring bilinear rows.
    """
    R = _interp_matrix(H, 2 * H)                                     # (2H, H)
    Rp = jnp.zeros((2 * H + 2, H), jnp.float32).at[1:2 * H + 1, :].set(R)
    th2 = 2 * th
    T = H // th
    return jnp.stack([Rp[t * th2:t * th2 + th2 + 2, :] for t in range(T)], 0)


def _padded_col_interp(W: int) -> jnp.ndarray:
    """(W, 2W+2): transposed col-interp matrix with zero first/last columns."""
    C = _interp_matrix(W, 2 * W)                                     # (2W, W)
    return jnp.zeros((W, 2 * W + 2), jnp.float32).at[:, 1:2 * W + 1].set(C.T)


# ----------------------------------------------------------------------------
# Fused kernel: bilinear 2x + 3x3 conv + folded BN + PReLU
# ----------------------------------------------------------------------------
def _fused_upsample_conv_bn_prelu_kernel(
        x_ref, rp_ref, g_ref, s_ref, b_ref, a_ref, o_ref):
    # x_ref : (1, H, Cin*W)            f32  channel-major-in-lanes input image
    # rp_ref: (1, TH2+2, H)            f32  row-tile slice of padded row-interp
    # g_ref : (3*Cin*W, Cout*2W)       bf16 fused (col-interp x 3x3 taps x mix)
    # s_ref : (1, Cout*2W)             f32  folded BN scale (per-lane)
    # b_ref : (1, Cout*2W)             f32  folded conv-bias + BN shift
    # a_ref : (1,)                     f32  PReLU slope (SMEM scalar)
    # o_ref : (1, TH2, Cout*2W)             lane-dense output row tile
    TH2 = o_ref.shape[1]                     # output rows in this tile

    # (1) Row pass of the bilinear 2x upsample as ONE f32 matmul; rp already
    #     contains the zero rows for the conv's top/bottom padding and the
    #     +-1-row halo of this tile.  Result stays in registers.
    up1 = jnp.dot(rp_ref[0], x_ref[0],
                  preferred_element_type=jnp.float32)       # (TH2+2, Cin*W)

    # (2) Width upsample + all three row taps + channel mix as a single MXU
    #     matmul: lhs is the concat of the three row-shifted slices of up1
    #     (one bf16 cast), K = 3*Cin*W, lanes = Cout*2W, f32 accumulation.
    lhs = jnp.concatenate(
        [up1[0:TH2, :], up1[1:TH2 + 1, :], up1[2:TH2 + 2, :]],
        axis=1).astype(jnp.bfloat16)                        # (TH2, 3*Cin*W)
    acc = jnp.dot(lhs, g_ref[...],
                  preferred_element_type=jnp.float32)       # (TH2, Cout*2W)

    # (3) Folded BatchNorm (inference) + PReLU epilogue, in f32.
    y = acc * s_ref[...] + b_ref[...]
    alpha = a_ref[0]
    y = jnp.where(y > 0, y, alpha * y)

    # (4) Lane-dense store: one unmasked (TH2, 256) slab per grid step.
    o_ref[0] = y.astype(o_ref.dtype)


def upsample_module(x, params, eps=1e-5, row_tile=None):
    """Forward pass of the PyTorch `Upsample` module (inference-mode BN)."""
    N, Cin, H, W = x.shape
    Cout = params["w"].shape[0]
    W2 = 2 * W

    # Default: no row-tile split (one whole image per grid step) -> minimum
    # grid overhead on v5e/v6e (1 TC) and N parallel steps for v7x (2 TCs).
    if row_tile is None:
        row_tile = H
    assert H % row_tile == 0
    assert (2 * row_tile) % 8 == 0 or row_tile == H
    T = H // row_tile
    TH2 = 2 * row_tile                    # output rows per tile
    THp = TH2 + 2                         # + 1-row conv halo on each side
    WQp = W2 + 2

    # --- wrapper-side layout: channel-major along lanes, NCHW -> (N, H, Cin*W)
    x_r = x.astype(jnp.float32).transpose(0, 2, 1, 3).reshape(N, H, Cin * W)

    # --- tiny constant matrices / folded parameters (no activation traffic) --
    rp_tiles = _padded_row_interp_tiles(H, row_tile)            # (T, THp, H)
    ctp = _padded_col_interp(W)                                 # (W, WQp)

    # G[dy*Cin*W + c*W + w, co*W2 + q]
    #   = sum_dx ctp[w, q+dx] * conv_w[co, c, dy, dx]
    # i.e. width-upsample + 3x3 taps + channel mixing fused into one matrix.
    ctp_shifts = jnp.stack([ctp[:, dx:dx + W2] for dx in range(3)], axis=0)
    g = jnp.einsum("xwq,ocyx->ycwoq", ctp_shifts,
                   params["w"].astype(jnp.float32))
    g = g.reshape(3 * Cin * W, Cout * W2).astype(jnp.bfloat16)

    # Fold BatchNorm (running stats) and the conv bias into scale/shift,
    # repeated per output column so they broadcast over the (co, q) lanes.
    scale = params["gamma"] / jnp.sqrt(params["running_var"] + eps)
    bias = (params["b"] - params["running_mean"]) * scale + params["beta"]
    s_row = jnp.repeat(scale.astype(jnp.float32), W2).reshape(1, Cout * W2)
    b_row = jnp.repeat(bias.astype(jnp.float32), W2).reshape(1, Cout * W2)
    alpha = jnp.reshape(params["prelu_alpha"], (1,)).astype(jnp.float32)

    # VMEM sizing guard (generation-aware: smallest scoped default is 16 MiB
    # on v5e, and v7x only has 64 MiB physical).  Double-buffered blocks + G.
    # For shapes that break this, switch to a tiled-W / im2col matmul instead
    # of the dense-G fold.
    vmem_est = (2 * (H * Cin * W + THp * H + TH2 * Cout * W2 + 2 * Cout * W2) * 4
                + 2 * g.size * 2)
    assert vmem_est < 12 * 2 ** 20, (
        f"dense-G fused path needs ~{vmem_est} B VMEM; use a tiled-W fallback")

    flops = N * T * (2 * THp * H * (Cin * W)                    # row pass
                     + 2 * TH2 * (3 * Cin * W) * (Cout * W2)    # fused conv
                     + 3 * TH2 * Cout * W2)                     # epilogue
    bytes_accessed = (x_r.size * 4 + N * 2 * H * Cout * W2 * 4
                      + g.size * 2 + rp_tiles.size * 4
                      + s_row.size * 4 + b_row.size * 4 + 4)

    out_flat = pl.pallas_call(
        _fused_upsample_conv_bn_prelu_kernel,
        out_shape=jax.ShapeDtypeStruct((N, 2 * H, Cout * W2), jnp.float32),
        grid=(N, T),
        in_specs=[
            pl.BlockSpec((1, H, Cin * W), lambda n, t: (n, 0, 0)),
            pl.BlockSpec((1, THp, H), lambda n, t: (t, 0, 0)),
            pl.BlockSpec((3 * Cin * W, Cout * W2), lambda n, t: (0, 0)),
            pl.BlockSpec((1, Cout * W2), lambda n, t: (0, 0)),
            pl.BlockSpec((1, Cout * W2), lambda n, t: (0, 0)),
            pl.BlockSpec(memory_space=pltpu.MemorySpace.SMEM),
        ],
        out_specs=pl.BlockSpec((1, TH2, Cout * W2), lambda n, t: (n, t, 0)),
        compiler_params=pltpu.CompilerParams(
            dimension_semantics=("parallel", "parallel")),
        cost_estimate=pl.CostEstimate(
            flops=int(flops), transcendentals=0,
            bytes_accessed=int(bytes_accessed)),
    )(x_r, rp_tiles, g, s_row, b_row, alpha)

    # Cheap wrapper-side reshape back to NCHW (256 KB tensor -> noise).
    return out_flat.reshape(N, 2 * H, Cout, W2).transpose(0, 2, 1, 3)


if __name__ == "__main__":
    N, Cin, Cout, H, W = 2, 4, 8, 16, 16

    key = jax.random.PRNGKey(0)
    kx, kw, kb, kg, kbe, km, kv = jax.random.split(key, 7)

    x = jax.random.normal(kx, (N, Cin, H, W), dtype=jnp.float32)

    # Deterministic synthetic parameters (shapes per the PyTorch module).
    # NOTE: BatchNorm2d is evaluated in inference mode with running stats.
    params = {
        "w": jax.random.normal(kw, (Cout, Cin, 3, 3), jnp.float32)
             * math.sqrt(2.0 / (Cin * 9)),
        "b": jax.random.normal(kb, (Cout,), jnp.float32) * 0.05,
        "gamma": 1.0 + 0.1 * jax.random.normal(kg, (Cout,), jnp.float32),
        "beta": 0.1 * jax.random.normal(kbe, (Cout,), jnp.float32),
        "running_mean": 0.1 * jax.random.normal(km, (Cout,), jnp.float32),
        "running_var": 0.5 + jax.random.uniform(kv, (Cout,), jnp.float32),
        "prelu_alpha": jnp.float32(0.25),   # nn.PReLU() default init
    }

    out = jax.block_until_ready(upsample_module(x, params))
    assert out.shape == (N, Cout, 2 * H, 2 * W), out.shape

    # Pure-JAX f32 reference with the same PyTorch semantics.
    R = _interp_matrix(H, 2 * H)
    Ct = _interp_matrix(W, 2 * W).T
    up_ref = jnp.einsum("ph,nchw->ncpw", R, x)
    up_ref = jnp.einsum("ncpw,wq->ncpq", up_ref, Ct)
    conv_ref = jax.lax.conv_general_dilated(
        up_ref, params["w"], window_strides=(1, 1), padding="SAME",
        dimension_numbers=("NCHW", "OIHW", "NCHW"),
    ) + params["b"].reshape(1, -1, 1, 1)
    eps = 1e-5
    bn_ref = (conv_ref - params["running_mean"].reshape(1, -1, 1, 1)) / jnp.sqrt(
        params["running_var"].reshape(1, -1, 1, 1) + eps
    ) * params["gamma"].reshape(1, -1, 1, 1) + params["beta"].reshape(1, -1, 1, 1)
    ref = jnp.where(bn_ref > 0, bn_ref, params["prelu_alpha"] * bn_ref)

    # Tolerance sized for bf16 matmul operands with f32 accumulation (typical
    # |err| ~1e-2 for O(1) values); interpolation / BN / PReLU math is f32.
    max_err = float(jnp.max(jnp.abs(out - ref)))
    assert jnp.allclose(out, ref, atol=5e-2, rtol=5e-2), max_err

    print("KERNEL_OK")
</pallas_src>

<mosaic_0001>
module attributes {stable_mosaic.version = 11 : i64} {
  func.func @_fused_upsample_conv_bn_prelu_kernel(%arg0: i32, %arg1: i32, %arg2: memref<1x16x64xf32, #tpu.memory_space<vmem>>, %arg3: memref<1x34x16xf32, #tpu.memory_space<vmem>>, %arg4: memref<192x256xbf16, #tpu.memory_space<vmem>>, %arg5: memref<1x256xf32, #tpu.memory_space<vmem>>, %arg6: memref<1x256xf32, #tpu.memory_space<vmem>>, %arg7: memref<1xf32, #tpu.memory_space<smem>>, %arg8: memref<1x32x256xf32, #tpu.memory_space<vmem>>) attributes {dimension_semantics = [#tpu.dimension_semantics<parallel>, #tpu.dimension_semantics<parallel>], iteration_bounds = array<i64: 2, 1>, scalar_prefetch = 0 : i64, scratch_operands = 0 : i64, tpu.core_type = #tpu.core_type<tc>, window_params = [{transform_indices = @transform_0, window_bounds = array<i64: 1, 16, 64>}, {transform_indices = @transform_1, window_bounds = array<i64: 1, 34, 16>}, {pipeline_mode = #tpu.pipeline_mode<synchronous>, transform_indices = @transform_2, window_bounds = array<i64: 192, 256>}, {pipeline_mode = #tpu.pipeline_mode<synchronous>, transform_indices = @transform_3, window_bounds = array<i64: 1, 256>}, {pipeline_mode = #tpu.pipeline_mode<synchronous>, transform_indices = @transform_4, window_bounds = array<i64: 1, 256>}, {transform_indices = @transform_5, window_bounds = array<i64: 1>}, {transform_indices = @transform_6, window_bounds = array<i64: 1, 32, 256>}]} {
    %c0 = arith.constant 0 : index
    %c0_0 = arith.constant 0 : index
    %c0_1 = arith.constant 0 : index
    %0 = vector.load %arg3[%c0, %c0_0, %c0_1] : memref<1x34x16xf32, #tpu.memory_space<vmem>>, vector<1x34x16xf32>
    %1 = vector.shape_cast %0 : vector<1x34x16xf32> to vector<34x16xf32>
    %c0_2 = arith.constant 0 : index
    %c0_3 = arith.constant 0 : index
    %c0_4 = arith.constant 0 : index
    %2 = vector.load %arg2[%c0_2, %c0_3, %c0_4] : memref<1x16x64xf32, #tpu.memory_space<vmem>>, vector<1x16x64xf32>
    %3 = vector.shape_cast %2 : vector<1x16x64xf32> to vector<16x64xf32>
    %cst = arith.constant dense<0.000000e+00> : vector<34x64xf32>
    %4 = tpu.matmul %1, %3, %cst {dimension_numbers = #tpu.dot_dimension_numbers<[1], [0], [0], [1], [0, 0, 1, 1], [], []>} : vector<34x16xf32>, vector<16x64xf32>, vector<34x64xf32> -> vector<34x64xf32>
    %5 = vector.extract_strided_slice %4 {offsets = [0, 0], sizes = [32, 64], strides = [1, 1]} : vector<34x64xf32> to vector<32x64xf32>
    %6 = vector.extract_strided_slice %4 {offsets = [1, 0], sizes = [32, 64], strides = [1, 1]} : vector<34x64xf32> to vector<32x64xf32>
    %7 = vector.extract_strided_slice %4 {offsets = [2, 0], sizes = [32, 64], strides = [1, 1]} : vector<34x64xf32> to vector<32x64xf32>
    %8 = tpu.concatenate %5, %6, %7 in 1 : vector<32x64xf32>, vector<32x64xf32>, vector<32x64xf32> -> vector<32x192xf32>
    %9 = arith.truncf %8 : vector<32x192xf32> to vector<32x192xbf16>
    %c0_5 = arith.constant 0 : index
    %c0_6 = arith.constant 0 : index
    %10 = vector.load %arg4[%c0_5, %c0_6] : memref<192x256xbf16, #tpu.memory_space<vmem>>, vector<192x256xbf16>
    %cst_7 = arith.constant dense<0.000000e+00> : vector<32x256xf32>
    %11 = tpu.matmul %9, %10, %cst_7 {dimension_numbers = #tpu.dot_dimension_numbers<[1], [0], [0], [1], [0, 0, 1, 1], [], []>} : vector<32x192xbf16>, vector<192x256xbf16>, vector<32x256xf32> -> vector<32x256xf32>
    %c0_8 = arith.constant 0 : index
    %c0_9 = arith.constant 0 : index
    %12 = vector.load %arg5[%c0_8, %c0_9] : memref<1x256xf32, #tpu.memory_space<vmem>>, vector<1x256xf32>
    %13 = vector.broadcast %12 : vector<1x256xf32> to vector<32x256xf32>
    %14 = arith.mulf %11, %13 : vector<32x256xf32>
    %c0_10 = arith.constant 0 : index
    %c0_11 = arith.constant 0 : index
    %15 = vector.load %arg6[%c0_10, %c0_11] : memref<1x256xf32, #tpu.memory_space<vmem>>, vector<1x256xf32>
    %16 = vector.broadcast %15 : vector<1x256xf32> to vector<32x256xf32>
    %17 = arith.addf %14, %16 : vector<32x256xf32>
    %c0_12 = arith.constant 0 : index
    %18 = memref.load %arg7[%c0_12] : memref<1xf32, #tpu.memory_space<smem>>
    %cst_13 = arith.constant 0.000000e+00 : f32
    %19 = vector.broadcast %cst_13 : f32 to vector<32x256xf32>
    %20 = arith.cmpf ogt, %17, %19 : vector<32x256xf32>
    %21 = vector.broadcast %18 : f32 to vector<32x256xf32>
    %22 = arith.mulf %21, %17 : vector<32x256xf32>
    %23 = arith.select %20, %17, %22 : vector<32x256xi1>, vector<32x256xf32>
    %c0_14 = arith.constant 0 : index
    %c0_15 = arith.constant 0 : index
    %c0_16 = arith.constant 0 : index
    %24 = vector.load %arg8[%c0_14, %c0_15, %c0_16] : memref<1x32x256xf32, #tpu.memory_space<vmem>>, vector<1x32x256xf32>
    %25 = vector.shape_cast %24 : vector<1x32x256xf32> to vector<32x256xf32>
    %26 = vector.shape_cast %23 : vector<32x256xf32> to vector<1x32x256xf32>
    tpu.vector_store %arg8[%c0_14, %c0_15, %c0_16], %26 {strides = array<i32>} : memref<1x32x256xf32, #tpu.memory_space<vmem>>, vector<1x32x256xf32>,
    return
  }
  func.func @transform_0(%arg0: i32, %arg1: i32) -> (i32, i32, i32) {
    %c0_i32 = arith.constant 0 : i32
    %c0_i32_0 = arith.constant 0 : i32
    %c0_i32_1 = arith.constant 0 : i32
    return %arg0, %c0_i32, %c0_i32_0 : i32, i32, i32
  }
  func.func @transform_1(%arg0: i32, %arg1: i32) -> (i32, i32, i32) {
    %c0_i32 = arith.constant 0 : i32
    %c0_i32_0 = arith.constant 0 : i32
    %c0_i32_1 = arith.constant 0 : i32
    return %arg1, %c0_i32, %c0_i32_0 : i32, i32, i32
  }
  func.func @transform_2(%arg0: i32, %arg1: i32) -> (i32, i32) {
    %c0_i32 = arith.constant 0 : i32
    %c0_i32_0 = arith.constant 0 : i32
    %c0_i32_1 = arith.constant 0 : i32
    return %c0_i32, %c0_i32_0 : i32, i32
  }
  func.func @transform_3(%arg0: i32, %arg1: i32) -> (i32, i32) {
    %c0_i32 = arith.constant 0 : i32
    %c0_i32_0 = arith.constant 0 : i32
    %c0_i32_1 = arith.constant 0 : i32
    return %c0_i32, %c0_i32_0 : i32, i32
  }
  func.func @transform_4(%arg0: i32, %arg1: i32) -> (i32, i32) {
    %c0_i32 = arith.constant 0 : i32
    %c0_i32_0 = arith.constant 0 : i32
    %c0_i32_1 = arith.constant 0 : i32
    return %c0_i32, %c0_i32_0 : i32, i32
  }
  func.func @transform_5(%arg0: i32, %arg1: i32) -> i32 {
    %c0_i32 = arith.constant 0 : i32
    %c0_i32_0 = arith.constant 0 : i32
    return %c0_i32 : i32
  }
  func.func @transform_6(%arg0: i32, %arg1: i32) -> (i32, i32, i32) {
    %c0_i32 = arith.constant 0 : i32
    %c0_i32_0 = arith.constant 0 : i32
    return %arg0, %arg1, %c0_i32 : i32, i32, i32
  }
}

</mosaic_0001>

<bundles_post_ra>
// kernel: tpu_custom_call.1
= control target key start
LH: loop header
LB: loop body
LE: loop exit
PB: predicated region body
PF: predicated region fallthrough
CT: control target
= control target key end

     0   :  { %s1422_s0 = inlined_call_operand.vmem [shape: f32[2,16,64], index: 0, kind: input, shape index: {}]   ;;  %s1423_s1 = inlined_call_operand.vmem [shape: f32[1,34,16], index: 1, kind: input, shape index: {}]   ;;  %s1424_s2 = inlined_call_operand.hbm [shape: bf16[192,256], index: 2, kind: input, shape index: {}]   ;;  %s1425_s3 = inlined_call_operand.vmem [shape: f32[1,256], index: 3, kind: input, shape index: {}]   ;;  %s1426_s4 = inlined_call_operand.vmem [shape: f32[1,256], index: 4, kind: input, shape index: {}]   ;;  %s1427_s5 = inlined_call_operand.<no memory space> [shape: f32[1], index: 5, kind: input, shape index: {}]   ;;  %s1428_s6 = inlined_call_operand.hbm [shape: f32[2,32,256], index: 6, kind: output, shape index: {}]  }
   0x1   :  { %11 = sst [smem:[#allocation2]] %s1427_s5 }
   0x2   :  { %12 = vsyncpa [#allocation4], 0 }
   0x3   :  { %13 = vsyncpa [#allocation5], 0 }
   0x4   :  { %15 = vsyncpa [#allocation5 + $0x1], 0  ;;  %s1232_s23 = smov 0   ;;  %s1234_s24 = smov 0  }
   0x5   :  { %s1236_s25 = smov 0   ;;  %s1238_s26 = smov 0  }
   0x6   :  { %s1240_s27 = smov 0   ;;  %s1242_s28 = smov 0  }
   0x7 LB: > { %s859_s5 = sadd.s32 4294967295, %s1183_s28   ;;  %s860_s29 = sadd.s32 4294967294, %s1183_s28   ;;  %s1183_s28 = sphi %s1242_s28, %s21_s28   ;;  %s1179_s27 = sphi %s1240_s27, %s1437_s27   ;;  %s1175_s26 = sphi %s1238_s26, %s1436_s26   ;;  %s1171_s25 = sphi %s1236_s25, %s1435_s25   ;;  %s1167_s24 = sphi %s1234_s24, %s1434_s24   ;;  %s1163_s23 = sphi %s1232_s23, %s1433_s23  }
   0x8   : > { %s33_s30 = sadd.s32 1, %s1179_s27  ;;  %s178_s7 = sadd.s32 1, %s1171_s25 }
   0x9   : > { %p35_p0 = scmp.ge.s32.totalorder %s33_s30, 2  ;;  %p188_p1 = scmp.ne.s32.totalorder %s1171_s25, %s1167_s24 }
   0xa   : > { %p189_p2 = scmp.eq.s32.totalorder %s859_s5, 1  ;;  %p194_p3 = scmp.ne.s32.totalorder %s1167_s24, %s1163_s23 }
   0xb   : > { %s1439_s30 = smov (%p35_p0, %s33_s30), 0  ;;  %p195_p5 = scmp.eq.s32.totalorder %s860_s29, 1 }
   0xc   : > { %p1272_p4 = por %p189_p2, %p188_p1  ;;  %s173_s9 = ssub.s32 %s1179_s27, %s1439_s30 }
   0xd   : > { %p861_p6 = scmp.ge.s32.totalorder %s1183_s28, 1  ;;  %p176_p7 = scmp.eq.s32.totalorder %s173_s9, 0 }
   0xe   : > { %p1279_p8 = por %p195_p5, %p194_p3  ;;  %p202_p9 = scmp.lt.s32.totalorder %s1183_s28, 3 }
   0xf   : > { %s1285_s11 = scalar_select %p176_p7, %s1171_s25, %s178_s7  }
  0x10   : > { %p1287_p10 = pnand %p861_p6, %p202_p9  ;;  %p1291_p11 = scmp.eq.s32.totalorder %s859_s5, 0 }
  0x11   : > { %s1185_s14 = smov [#allocation3]  }
  0x12   : > { %p964_p12 = pneg %p1287_p10  ;;  %s222_s15 = sshll.u32 %s1185_s14, 4  ;;  %s223_s15 = int_to_ptr.vmem [resolvable:$true] %s222_s15 }
  0x13   : > { %s1088_s16 = scalar_lea.vmem %s223_s15, 3072  ;;  %p1096_p5 = scmp.lt.s32.totalorder %s223_s15, %s223_s15 }
  0x14   : > { %p965_p13 = pnand %p1291_p11, %p964_p12  ;;  %p1089_p1 = scmp.ne.s32.totalorder %s223_s15, %s1088_s16 }
  0x15   : > { %p1097_p6 = scmp.lt.s32.totalorder %s1088_s16, %s1088_s16 }
  0x16   : > { %p1079_p0 = pneg %p965_p13 }
  0x17   : > { %p1098_p7 = por %p1097_p6, %p1096_p5 }
  0x18   : > { %p1091_p2 = pnand %p1089_p1, %p1079_p0 }
  0x1a   : > { %p1092_p3 = pneg %p1091_p2 }
  0x1c   : > { %p1099_p9 = pnand %p1098_p7, %p1092_p3 }
  0x1e   : > { %1102 = shalt.err (!%p1099_p9)
}
  0x1f   : > { %s1186_s17 = smov 128   ;;  %s1187_s18 = smov 8  }
  0x20   : > { %967 = dma.hbm_to_vmem [thread:$0]  (!%p965_p13), %s1424_s2, 3072, %s223_s15, [#allocation4], %s1186_s17, %s1186_s17, %s1187_s18  }
  0x21   : > { %255 = sbr.rel (%p1287_p10) target bundleno = 604 (0x25c), region = 44 }
  0x26   : > { %1154 = dma.done.wait (%p1291_p11), [#allocation4], 3072  }
  0x27   : > { %1156 = vsyncadd (%p1291_p11), [#allocation4], 4294964224  ;;  %p290_p12 = scmp.lt.s32.totalorder %s1175_s26, 1  ;;  %v1188_v0 = vmov 0.0   ;;  %vm1189_vm0 = vmmov 0   ;;  %v302_v3 = vld [vmem:[%s1423_s1] sm:$0xff] }
  0x28   : > { %915 = vmatprep.subr.mxu0 %v1188_v0  ;;  %919 = vmatprep.mubr.msk.f32.mxu0 %vm1189_vm0, %v1188_v0  ;;  %vm309_vm1 = vcmask 130048   ;;  %v303_v4 = vld [vmem:[%s1423_s1 + $0x8] sm:$0xff]  ;;  %v304_v5 = vld [vmem:[%s1423_s1 + $0x10] sm:$0xff]  ;;  %v305_v6 = vld [vmem:[%s1423_s1 + $0x18] sm:$0xff]  ;;  %vm442_vm2 = vcmask 1045504   ;;  %vm420_vm3 = vcmask 1046528  }
  0x29   : > { %s291_s21 = scalar_select %p290_p12, %s1175_s26, 1  ;;  %v306_v7 = vld [vmem:[%s1423_s1 + $0x20] sm:$0x3]  ;;  %v1041_v8 = vld [vmem:[#allocation3 + $0x70] ss:$8 sps:$4 sm:$0xff]   ;;  %vm456_vm4 = vcmask 523264  }
  0x2a   : > { %v1043_v9 = vld [vmem:[#allocation3 + $0x74] ss:$8 sps:$4 sm:$0xff]   ;;  %v1046_v10 = vld [vmem:[#allocation3 + $0x64] ss:$8 sps:$4 sm:$0xff]   ;;  %v1044_v11 = vld [vmem:[#allocation3 + $0x60] ss:$8 sps:$4 sm:$0xff]  }
  0x2b   : > { %s906_s22 = sshll.u32 %s291_s21, 4  ;;  %934 = vmatprep.subr.bf16.mxu1 %v1043_v9  ;;  %v1049_v12 = vld [vmem:[#allocation3 + $0x54] ss:$8 sps:$4 sm:$0xff]   ;;  %v1047_v13 = vld [vmem:[#allocation3 + $0x50] ss:$8 sps:$4 sm:$0xff]   ;;  %s1190_s21 = smov 64  }
  0x2c   : > { %s294_s7 = scalar_lea.vmem %s1422_s0, %s906_s22  ;;  %946 = vmatpush1.bf16.msra.mxu1 %v1041_v8  ;;  %v1052_v14 = vld [vmem:[#allocation3 + $0x44] ss:$8 sps:$4 sm:$0xff]   ;;  %v1050_v15 = vld [vmem:[#allocation3 + $0x40] ss:$8 sps:$4 sm:$0xff]   ;;  %v1055_v16 = vld [vmem:[#allocation3 + $0x34] ss:$8 sps:$4 sm:$0xff]  }
  0x2d   : > { %v308_v1 = vld [vmem:[%s294_s7 + $0x8] sm:$0xff]  ;;  %v307_v2 = vld [vmem:[%s294_s7] sm:$0xff]  ;;  %935 = vmatprep.subr.bf16.mxu1 %v1046_v10  ;;  %v1053_v17 = vld [vmem:[#allocation3 + $0x30] ss:$8 sps:$4 sm:$0xff]   ;;  %s708_s29 = sld [smem:[#allocation2]]  ;;  %s287_s12 = sand.u32 1, %s1167_s24  }
  0x2e   : > { %916 = vmatpush3.msra.mxu0 %v308_v1  ;;  %v1058_v18 = vld [vmem:[#allocation3 + $0x24] ss:$8 sps:$4 sm:$0xff]   ;;  %v1056_v19 = vld [vmem:[#allocation3 + $0x20] ss:$8 sps:$4 sm:$0xff]   ;;  %v1061_v20 = vld [vmem:[#allocation3 + $0x14] ss:$8 sps:$4 sm:$0xff]  }
  0x2f   : > { %917 = vmatprep.subr.mxu0 %v1188_v0  ;;  %v1059_v21 = vld [vmem:[#allocation3 + $0x10] ss:$8 sps:$4 sm:$0xff]   ;;  %v1064_v22 = vld [vmem:[#allocation3 + $0x4] ss:$8 sps:$4 sm:$0xff]   ;;  %v1062_v23 = vld [vmem:[#allocation3] ss:$8 sps:$4 sm:$0xff]  }
  0x30   : > { %918 = vmatpush3.msra.mxu0 %v307_v2  ;;  %947 = vmatpush1.bf16.msra.mxu1 %v1044_v11  ;;  %v1067_v24 = vld [vmem:[#allocation3 + $0xb4] ss:$8 sps:$4 sm:$0xff]   ;;  %v1065_v25 = vld [vmem:[#allocation3 + $0xb0] ss:$8 sps:$4 sm:$0xff]   ;;  %v1070_v26 = vld [vmem:[#allocation3 + $0xa4] ss:$8 sps:$4 sm:$0xff]  }
  0x31   : > { %920 = vmatmul.mubr.msk.f32.vlgmr.msra.gmra.mxu0 %vm309_vm1, %v302_v3  ;;  %615 = vmatprep.subr.bf16.mxu0 %v1043_v9  ;;  %v1068_v27 = vld [vmem:[#allocation3 + $0xa0] ss:$8 sps:$4 sm:$0xff]   ;;  %v1073_v28 = vld [vmem:[#allocation3 + $0x94] ss:$8 sps:$4 sm:$0xff]   ;;  %v1071_v29 = vld [vmem:[#allocation3 + $0x90] ss:$8 sps:$4 sm:$0xff]  }
  0x32   : > { %922 = vmatprep.mubr.msk.f32.mxu0 %vm1189_vm0, %v1188_v0  ;;  %616 = vmatpush1.bf16.msra.mxu0 %v1041_v8  ;;  %v1076_v31 = vld [vmem:[#allocation3 + $0x84] ss:$8 sps:$4 sm:$0xff]   ;;  %v1074_v32 = vld [vmem:[#allocation3 + $0x80] ss:$8 sps:$4 sm:$0xff]   ;;  %s867_s13 = sshll.u32 %s287_s12, 6  ;;  %s907_s15 = sshll.u32 %s1175_s26, 10 }
  0x33   : > { %617 = vmatprep.subr.bf16.mxu0 %v1046_v10  ;;  %936 = vmatprep.subr.bf16.mxu1 %v1049_v12  ;;  %s1356_s14 = scalar_lea.vmem [#allocation6], %s867_s13  ;;  %s1370_s19 = scalar_lea.hbm %s1428_s6, %s907_s15 }
  0x34   : > { %948 = vmatpush1.bf16.msra.mxu1 %v1047_v13  ;;  %s759_s16 = sshll.u32 %s1356_s14, 4  ;;  %s1377_s26 = scalar_lea.sflag [#allocation5], %s287_s12  ;;  %s1372_s16 = int_to_ptr.vmem [resolvable:$true] %s759_s16 }
  0x35   : > { %923 = vmatmul.mubr.msk.f32.gmra.mxu0 %vm309_vm1, %v303_v4  ;;  %937 = vmatprep.subr.bf16.mxu1 %v1052_v14  ;;  %s1103_s20 = scalar_lea.vmem %s1372_s16, 1024 }
  0x36   : > { %925 = vmatprep.mubr.msk.f32.mxu0 %vm1189_vm0, %v1188_v0  ;;  %618 = vmatpush1.bf16.msra.mxu0 %v1044_v11  ;;  %p1104_p10 = scmp.ne.s32.totalorder %s1372_s16, %s1103_s20 }
  0x37   : > { %619 = vmatprep.subr.bf16.mxu0 %v1049_v12  ;;  %v670_v12 = vlaneseq }
  0x38   : > { %949 = vmatpush1.bf16.msra.mxu1 %v1050_v15  ;;  %p1105_p11 = pnand %p1104_p10, %p1272_p4 }
  0x39   : > { %926 = vmatmul.mubr.msk.f32.gmra.mxu0 %vm309_vm1, %v304_v5  ;;  %938 = vmatprep.subr.bf16.mxu1 %v1055_v16 }
  0x3a   : > { %928 = vmatprep.mubr.msk.f32.mxu0 %vm1189_vm0, %v1188_v0  ;;  %620 = vmatpush1.bf16.msra.mxu0 %v1047_v13  ;;  %v671_v13 = vshrl.u32 %v670_v12, 7  ;;  %p1106_p13 = pneg %p1105_p11 }
  0x3b   : > { %621 = vmatprep.subr.bf16.mxu0 %v1052_v14 }
  0x3c   : > { %950 = vmatpush1.bf16.msra.mxu1 %v1053_v17  ;;  %v672_v14 = vsub.s32 0, %v671_v13 }
  0x3d   : > { %929 = vmatmul.mubr.msk.f32.gmra.mxu0 %vm309_vm1, %v305_v6  ;;  %939 = vmatprep.subr.bf16.mxu1 %v1058_v18 }
  0x3e   : > { %931 = vmatprep.mubr.msk.f32.mxu0 %vm1189_vm0, %v1188_v0  ;;  %622 = vmatpush1.bf16.msra.mxu0 %v1050_v15  ;;  %v668_v15 = vld [vmem:[%s1425_s3] sm:$0x3] }
  0x3f   : > { %623 = vmatprep.subr.bf16.mxu0 %v1055_v16  ;;  %v676_v16 = vsub.s32 1, %v671_v13 }
  0x40   : > { %951 = vmatpush1.bf16.msra.mxu1 %v1056_v19 }
  0x41   : > { %932 = vmatmul.mubr.msk.f32.gmra.mxu0 %vm309_vm1, %v306_v7  ;;  %940 = vmatprep.subr.bf16.mxu1 %v1061_v20 }
  0x42   : > { %624 = vmatpush1.bf16.msra.mxu0 %v1053_v17  ;;  %v688_v17 = vld [vmem:[%s1426_s4] sm:$0x3] }
  0x43   : > { %625 = vmatprep.subr.bf16.mxu0 %v1058_v18  ;;  %v673_v18 = vrot.slane %v668_v15, %v672_v14 }
  0x44   : > { %952 = vmatpush1.bf16.msra.mxu1 %v1059_v21 }
  0x45   : > { %941 = vmatprep.subr.bf16.mxu1 %v1064_v22 }
  0x46   : > { %626 = vmatpush1.bf16.msra.mxu0 %v1056_v19  ;;  %v693_v19 = vrot.slane %v688_v17, %v672_v14 }
  0x47   : > { %627 = vmatprep.subr.bf16.mxu0 %v1061_v20  ;;  %v677_v20 = vrot.slane %v668_v15, %v676_v16 }
  0x48   : > { %953 = vmatpush1.bf16.msra.mxu1 %v1062_v23 }
  0x49   : > { %942 = vmatprep.subr.bf16.mxu1 %v1067_v24 }
  0x4a   : > { %628 = vmatpush1.bf16.msra.mxu0 %v1059_v21 }
  0x4b   : > { %629 = vmatprep.subr.bf16.mxu0 %v1064_v22 }
  0x4c   : > { %954 = vmatpush2.bf16.msra.mxu1 %v1065_v25 }
  0x4d   : > { %943 = vmatprep.subr.bf16.mxu1 %v1070_v26 }
  0x4e   : > { %630 = vmatpush1.bf16.msra.mxu0 %v1062_v23  ;;  %v697_v23 = vrot.slane %v688_v17, %v676_v16 }
  0x4f   : > { %639 = vmatprep.subr.bf16.mxu0 %v1067_v24  ;;  %v717_v24 = vstv %s708_s29 }
  0x50   : > { %955 = vmatpush2.bf16.msra.mxu1 %v1068_v27 }
  0x51   : > { %944 = vmatprep.subr.bf16.mxu1 %v1073_v28 }
  0x52   : > { %640 = vmatpush2.bf16.msra.mxu0 %v1065_v25 }
  0x53   : > { %641 = vmatprep.subr.bf16.mxu0 %v1070_v26 }
  0x54   : > { %956 = vmatpush2.bf16.msra.mxu1 %v1071_v29 }
  0x55   : > { %945 = vmatprep.subr.bf16.mxu1 %v1076_v31 }
  0x56   : > { %642 = vmatpush2.bf16.msra.mxu0 %v1068_v27 }
  0x57   : > { %643 = vmatprep.subr.bf16.mxu0 %v1073_v28 }
  0x58   : > { %957 = vmatpush2.bf16.msra.mxu1 %v1074_v32 }
  0x5a   : > { %644 = vmatpush2.bf16.msra.mxu0 %v1071_v29 }
  0x5b   : > { %645 = vmatprep.subr.bf16.mxu0 %v1076_v31 }
  0x5e   : > { %646 = vmatpush2.bf16.msra.mxu0 %v1074_v32 }
  0xf1   : > { %v391_v30 = vpop.f32.mrf.mxu0 }
  0xf2   : > { %v421_v39 = vrot.slane %v391_v30, 1  ;;  %v443_v40 = vrot.slane %v391_v30, 2 }
  0xf3   : > { %v921_v33 = vpop.f32.mrf.mxu0 }
  0xf5   : > { %v396_v34 = vpop.f32.mrf.mxu0 }
  0xf6   : > { %v422_v36 = vrot.slane %v396_v34, 1  ;;  %v444_v37 = vrot.slane %v396_v34, 2 }
  0xf7   : > { %v924_v35 = vpop.f32.mrf.mxu0 }
  0xf8   : > { %v445_v44 = vsel %vm442_vm2, %v443_v40, %v444_v37  ;;  %v423_v46 = vsel %vm420_vm3, %v421_v39, %v422_v36 }
  0xf9   : > { %v401_v38 = vpop.f32.mrf.mxu0 }
  0xfa   : > { %v424_v41 = vrot.slane %v401_v38, 1  ;;  %v446_v42 = vrot.slane %v401_v38, 2 }
  0xfb   : > { %v927_v43 = vpop.f32.mrf.mxu0 }
  0xfc   : > { %v447_v45 = vsel %vm442_vm2, %v444_v37, %v446_v42  ;;  %v425_v47 = vsel %vm420_vm3, %v422_v36, %v424_v41 }
  0xfd   : > { %v406_v48 = vpop.f32.mrf.mxu0  ;;  %v462_v49 = vpack.c.bf16 %v447_v45, %v445_v44  ;;  %v1031_v50 = vpack.i.bf16 %v425_v47, %v423_v46 }
  0xfe   : > { %v426_v52 = vrot.slane %v406_v48, 1  ;;  %v448_v53 = vrot.slane %v406_v48, 2 }
  0xff   : > { %899 = vmatprep.mubr.msk.bf16.mxu0 %vm456_vm4, %v462_v49  ;;  %1032 = vrot.lane.b32.xlu0 %v1031_v50, %s1190_s21  ;;  %v930_v51 = vpop.f32.mrf.mxu0 }
 0x100   : > { %v449_v58 = vsel %vm442_vm2, %v446_v42, %v448_v53  ;;  %v427_v60 = vsel %vm420_vm3, %v424_v41, %v426_v52 }
 0x101   : > { %v411_v54 = vpop.f32.mrf.mxu0 }
 0x102   : > { %v428_v55 = vrot.slane %v411_v54, 1  ;;  %v450_v56 = vrot.slane %v411_v54, 2 }
 0x103   : > { %v933_v57 = vpop.f32.mrf.mxu0 }
 0x104   : > { %v451_v59 = vsel %vm442_vm2, %v448_v53, %v450_v56  ;;  %v429_v61 = vsel %vm420_vm3, %v426_v52, %v428_v55 }
 0x105   : > { %v464_v62 = vpack.c.bf16 %v451_v59, %v449_v58  ;;  %v1036_v63 = vpack.i.bf16 %v429_v61, %v427_v60 }
 0x107   : > { %900 = vmatprep.mubr.msk.bf16.mxu1 %vm456_vm4, %v464_v62  ;;  %1037 = vrot.lane.b32.xlu0 %v1036_v63, %s1190_s21  ;;  %s1191_s21 = smov [#allocation6]  }
 0x108   : > { %s1107_s22 = sshll.u32 %s1191_s21, 4  ;;  %s1108_s22 = int_to_ptr.vmem [resolvable:$false] %s1107_s22 }
 0x109   : > { %s1109_s5 = scalar_lea.vmem %s1108_s22, 2048  ;;  %p1110_p0 = scmp.lt.s32.totalorder %s1372_s16, %s1108_s22 }
 0x10a   : > { %p1111_p1 = scmp.lt.s32.totalorder %s1109_s5, %s1103_s20 }
 0x10c   : > { %p1112_p2 = por %p1111_p1, %p1110_p0 }
 0x10e   : > { %p1113_p3 = pnand %p1112_p2, %p1106_p13 }
 0x171   : > { %v1033_v0 = vpop.permute.xlu0 %1032 }
 0x172   : > { %v1035_v1 = vunpack.i.h.bf16 %v1033_v0  ;;  %v1034_v2 = vunpack.i.l.bf16 %v1033_v0 }
 0x174   : > { %v458_v3 = vsel %vm456_vm4, %v396_v34, %v1035_v1  ;;  %v457_v4 = vsel %vm456_vm4, %v391_v30, %v1034_v2 }
 0x175   : > { %v461_v5 = vpack.c.bf16 %v458_v3, %v457_v4 }
 0x177   : > { %648 = vmatmul.mubr.bf16.vlgmr.msra.gmra.mxu0 %v461_v5 }
 0x179   : > { %v1038_v6 = vpop.permute.xlu0 %1037 }
 0x17a   : > { %v1040_v7 = vunpack.i.h.bf16 %v1038_v6  ;;  %v1039_v8 = vunpack.i.l.bf16 %v1038_v6 }
 0x17c   : > { %v459_v9 = vsel %vm456_vm4, %v401_v38, %v1039_v8  ;;  %v460_v10 = vsel %vm456_vm4, %v406_v48, %v1040_v7 }
 0x17d   : > { %v463_v11 = vpack.c.bf16 %v460_v10, %v459_v9 }
 0x17f   : > { %658 = vmatmul.mubr.bf16.vlgmr.msra.gmra.mxu1 %v463_v11 }
 0x237   : > { %v649_v21 = vpop.f32.mrf.mxu0 }
 0x238   : > { %v680_v22 = vmul.f32 %v673_v18, %v649_v21 }
 0x239   : > { %v651_v25 = vpop.f32.mrf.mxu0 }
 0x23a   : > { %v700_v26 = vadd.f32 %v693_v19, %v680_v22  ;;  %v681_v27 = vmul.f32 %v677_v20, %v651_v25 }
 0x23b   : > { %v653_v28 = vpop.f32.mrf.mxu0 }
 0x23c   : > { %vm709_vm5 = vcmp.gt.f32.partialorder %v700_v26, 0.0  ;;  %v718_v29 = vmul.f32 %v717_v24, %v700_v26  ;;  %v701_v30 = vadd.f32 %v697_v23, %v681_v27  ;;  %v682_v31 = vmul.f32 %v673_v18, %v653_v28 }
 0x23d   : > { %v655_v32 = vpop.f32.mrf.mxu0 }
 0x23e   : > { %v726_v33 = vsel %vm709_vm5, %v700_v26, %v718_v29  ;;  %vm710_vm6 = vcmp.gt.f32.partialorder %v701_v30, 0.0  ;;  %v719_v34 = vmul.f32 %v717_v24, %v701_v30  ;;  %v702_v35 = vadd.f32 %v693_v19, %v682_v31 }
 0x23f   : > { %734 = vst [vmem:[%s1356_s14] sm:$0xff] %v726_v33  ;;  %v683_v36 = vmul.f32 %v677_v20, %v655_v32  ;;  %v659_v37 = vpop.f32.mrf.mxu1 }
 0x240   : > { %v727_v38 = vsel %vm710_vm6, %v701_v30, %v719_v34  ;;  %vm711_vm7 = vcmp.gt.f32.partialorder %v702_v35, 0.0  ;;  %v720_v39 = vmul.f32 %v717_v24, %v702_v35  ;;  %v684_v40 = vmul.f32 %v673_v18, %v659_v37 }
 0x241   : > { %735 = vst [vmem:[%s1356_s14 + $0x8] sm:$0xff] %v727_v38  ;;  %v703_v41 = vadd.f32 %v697_v23, %v683_v36  ;;  %v661_v42 = vpop.f32.mrf.mxu1 }
 0x242   : > { %v728_v43 = vsel %vm711_vm7, %v702_v35, %v720_v39  ;;  %v704_v44 = vadd.f32 %v693_v19, %v684_v40  ;;  %v685_v45 = vmul.f32 %v677_v20, %v661_v42 }
 0x243   : > { %736 = vst [vmem:[%s1356_s14 + $0x10] sm:$0xff] %v728_v43  ;;  %vm712_vm8 = vcmp.gt.f32.partialorder %v703_v41, 0.0  ;;  %v721_v46 = vmul.f32 %v717_v24, %v703_v41  ;;  %v663_v47 = vpop.f32.mrf.mxu1 }
 0x244   : > { %vm713_vm9 = vcmp.gt.f32.partialorder %v704_v44, 0.0  ;;  %v722_v48 = vmul.f32 %v717_v24, %v704_v44  ;;  %v705_v49 = vadd.f32 %v697_v23, %v685_v45  ;;  %v686_v50 = vmul.f32 %v673_v18, %v663_v47 }
 0x245   : > { %v729_v51 = vsel %vm712_vm8, %v703_v41, %v721_v46  ;;  %v665_v52 = vpop.f32.mrf.mxu1 }
 0x246   : > { %737 = vst [vmem:[%s1356_s14 + $0x18] sm:$0xff] %v729_v51  ;;  %v730_v53 = vsel %vm713_vm9, %v704_v44, %v722_v48  ;;  %vm714_vm10 = vcmp.gt.f32.partialorder %v705_v49, 0.0  ;;  %v723_v54 = vmul.f32 %v717_v24, %v705_v49  ;;  %v706_v55 = vadd.f32 %v693_v19, %v686_v50 }
 0x247   : > { %738 = vst [vmem:[%s1356_s14 + $0x20] sm:$0xff] %v730_v53  ;;  %v687_v56 = vmul.f32 %v677_v20, %v665_v52 }
 0x248   : > { %v731_v57 = vsel %vm714_vm10, %v705_v49, %v723_v54  ;;  %vm715_vm11 = vcmp.gt.f32.partialorder %v706_v55, 0.0  ;;  %v724_v58 = vmul.f32 %v717_v24, %v706_v55 }
 0x249   : > { %739 = vst [vmem:[%s1356_s14 + $0x28] sm:$0xff] %v731_v57  ;;  %v707_v59 = vadd.f32 %v697_v23, %v687_v56 }
 0x24a   : > { %v732_v60 = vsel %vm715_vm11, %v706_v55, %v724_v58 }
 0x24b   : > { %740 = vst [vmem:[%s1356_s14 + $0x30] sm:$0xff] %v732_v60  ;;  %vm716_vm12 = vcmp.gt.f32.partialorder %v707_v59, 0.0  ;;  %v725_v61 = vmul.f32 %v717_v24, %v707_v59 }
 0x24d   : > { %v733_v62 = vsel %vm716_vm12, %v707_v59, %v725_v61 }
 0x24e   : > { %741 = vst [vmem:[%s1356_s14 + $0x38] sm:$0xff] %v733_v62 }
 0x24f   : > { %1116 = shalt.err (!%p1113_p3)
}
 0x250   : > { %s1117_s29 = scalar_lea.hbm %s1370_s19, 1024  ;;  %s1121_s12 = scalar_lea.hbm %s1428_s6, 2048 }
 0x251   : > { %p1118_p5 = scmp.ne.s32.totalorder %s1370_s19, %s1117_s29  ;;  %p1122_p9 = scmp.lt.s32.totalorder %s1370_s19, %s1428_s6 }
 0x252   : > { %p1123_p12 = scmp.lt.s32.totalorder %s1121_s12, %s1117_s29 }
 0x253   : > { %p1119_p6 = pnand %p1118_p5, %p1272_p4 }
 0x254   : > { %p1124_p10 = por %p1123_p12, %p1122_p9 }
 0x255   : > { %p1120_p7 = pneg %p1119_p6 }
 0x257   : > { %p1125_p11 = pnand %p1124_p10, %p1120_p7 }
 0x259   : > { %1128 = shalt.err (!%p1125_p11)
}
 0x25a   : > { %s1192_s15 = smov 256   ;;  %s1193_s17 = smov 16  }
 0x25b   : > { %962 = dma.vmem_to_hbm [thread:$0]  (%p1272_p4), %s1372_s16, 1024, %s1370_s19, %s1377_s26, %s1192_s15, %s1192_s15, %s1193_s17  }
 0x25c PF: > { %p974_p13 = scmp.ge.s32.totalorder %s1183_s28, 2  ;;  %s774_s18 = sand.u32 1, %s1163_s23  }
 0x25d   : > { %s775_s20 = scalar_lea.sflag [#allocation5], %s774_s18 }
 0x25e   : > { %p969_p0 = pnand %p974_p13, %p1279_p8 }
 0x260   : > { %p970_p1 = pneg %p969_p0 }
 0x262   : > { %1158 = dma.done.wait (%p970_p1), %s775_s20, 1024  }
 0x263   : > { %1160 = vsyncadd (%p970_p1), %s775_s20, 4294966272  ;;  %s21_s28 = sadd.s32 1, %s1183_s28   ;;  %s1433_s23 = smov %s1167_s24 }
 0x264   : > { %p18_p2 = scmp.ge.s32.totalorder %s21_s28, 4   ;;  %s1434_s24 = smov %s1171_s25 }
 0x265   : > { %s1435_s25 = smov %s1285_s11  ;;  %s1436_s26 = smov %s1179_s27 }
 0x266   : > { %s1437_s27 = smov %s1439_s30  ;;  %20 = sbr.rel (!%p18_p2) target bundleno = 7 (0x7), region = 87 }
 0x26b   :  { %780 = vsyncpa [#allocation4], 1 }
 0x26c   :  { %782 = vsyncpa [#allocation4 + $0x1], 1 }
 0x26d   :  { %783 = vsyncpa [#allocation5], 1 }
 0x26e   :  { %785 = vsyncpa [#allocation5 + $0x1], 1 }

</bundles_post_ra>
